<compile_context>
chip_gen: v7x
topology: tpu7x:2x2x1
jax: 0.10.0
libtpu: 0.0.40
codegen_flags: <defaults>
</compile_context>

<pallas_src>
import functools
import math

import jax
import jax.numpy as jnp
from jax import lax
from jax.experimental import pallas as pl
from jax.experimental.pallas import tpu as pltpu


_NEG_BIG = -1e30  # finite "-inf": avoids inf-inf = NaN inside exp()


def _mha_flash_kernel(xq_ref, xkv_ref, wq_ref, wk_ref, wv_ref, wo_ref, bo_ref,
                      o_ref,
                      q_sc, m_sc, l_sc, acc_sc, out_sc,
                      *, tq: int, tk: int, scale: float):
    qi = pl.program_id(1)
    h = pl.program_id(2)
    ki = pl.program_id(3)
    nh = pl.num_programs(2)
    nk = pl.num_programs(3)

    # ---- init per (batch, q-tile): zero the output-projection accumulator.
    @pl.when(jnp.logical_and(h == 0, ki == 0))
    def _init_out():
        out_sc[...] = jnp.zeros(out_sc.shape, jnp.float32)

    # ---- init per (batch, q-tile, head): project Q once, reset softmax state.
    @pl.when(ki == 0)
    def _init_head():
        q = jnp.dot(xq_ref[0], wq_ref[0], preferred_element_type=jnp.float32)
        q_sc[...] = (q * scale).astype(jnp.bfloat16)  # fold 1/sqrt(hd) into Q
        m_sc[...] = jnp.full(m_sc.shape, _NEG_BIG, jnp.float32)
        l_sc[...] = jnp.zeros(l_sc.shape, jnp.float32)
        acc_sc[...] = jnp.zeros(acc_sc.shape, jnp.float32)

    # ---- causal tile skip: kv tile entirely in the future of this q tile.
    q_last = qi * tq + (tq - 1)   # largest query index in this q tile
    k_first = ki * tk             # smallest key index in this kv tile

    @pl.when(k_first <= q_last)
    def _attend():
        xkv = xkv_ref[0]                                            # (tk, d_in) bf16
        k = jnp.dot(xkv, wk_ref[0], preferred_element_type=jnp.float32)
        v = jnp.dot(xkv, wv_ref[0], preferred_element_type=jnp.float32)

        # scores: contract the head dim directly (no explicit transpose).
        s = lax.dot_general(q_sc[...], k.astype(jnp.bfloat16),
                            dimension_numbers=(((1,), (1,)), ((), ())),
                            preferred_element_type=jnp.float32)     # (tq, tk)

        # in-tile causal mask from absolute positions.
        q_idx = qi * tq + lax.broadcasted_iota(jnp.int32, (tq, tk), 0)
        k_idx = ki * tk + lax.broadcasted_iota(jnp.int32, (tq, tk), 1)
        s = jnp.where(k_idx <= q_idx, s, _NEG_BIG)

        # online softmax update.
        m_prev = m_sc[...]
        m_new = jnp.maximum(m_prev, jnp.max(s, axis=-1, keepdims=True))
        alpha = jnp.exp(m_prev - m_new)
        p = jnp.exp(s - m_new)                                      # (tq, tk) f32
        l_sc[...] = alpha * l_sc[...] + jnp.sum(p, axis=-1, keepdims=True)
        acc_sc[...] = alpha * acc_sc[...] + jnp.dot(
            p.astype(jnp.bfloat16), v.astype(jnp.bfloat16),
            preferred_element_type=jnp.float32)
        m_sc[...] = m_new

    # ---- finalize this head: normalize and accumulate the output projection.
    @pl.when(ki == nk - 1)
    def _finalize_head():
        ctx = acc_sc[...] * pl.reciprocal(l_sc[...], approx=True)   # (tq, hd)
        out_sc[...] += jnp.dot(ctx.astype(jnp.bfloat16), wo_ref[0],
                               preferred_element_type=jnp.float32)

    # ---- write the output block once per (batch, q-tile).
    @pl.when(jnp.logical_and(h == nh - 1, ki == nk - 1))
    def _write():
        o_ref[0] = (out_sc[...] + bo_ref[...]).astype(o_ref.dtype)


def multi_head_attention(x, wq, wk, wv, wo, bo, *, num_heads: int,
                         dropout: float = 0.0, tq: int = 128, tk: int = 256):
    """Fused causal MHA forward.

    x: (B, T, d_in); wq/wk/wv: (d_in, d_out); wo: (d_out, d_out); bo: (d_out,).
    Weights use the x @ W convention (nn.Linear weight transposed).
    """
    assert dropout == 0.0, "inference mode only"  # TODO(synk): training dropout
    B, T, d_in = x.shape
    d_out = wq.shape[1]
    assert d_out % num_heads == 0
    H = num_heads
    hd = d_out // num_heads

    tq = min(tq, T)
    tk = min(tk, T)
    assert T % tq == 0 and T % tk == 0, "T must be divisible by the tile sizes"
    # TODO(synk): pad ragged T instead of asserting divisibility.

    scale = 1.0 / math.sqrt(hd)

    # bf16 operands for the MXU; f32 accumulation happens inside the kernel.
    x_bf = x.astype(jnp.bfloat16)
    wq_h = wq.reshape(d_in, H, hd).transpose(1, 0, 2).astype(jnp.bfloat16)
    wk_h = wk.reshape(d_in, H, hd).transpose(1, 0, 2).astype(jnp.bfloat16)
    wv_h = wv.reshape(d_in, H, hd).transpose(1, 0, 2).astype(jnp.bfloat16)
    wo_h = wo.reshape(H, hd, d_out).astype(jnp.bfloat16)
    bo2 = bo.reshape(1, d_out).astype(jnp.float32)

    kernel = functools.partial(_mha_flash_kernel, tq=tq, tk=tk, scale=scale)
    grid = (B, T // tq, H, T // tk)

    return pl.pallas_call(
        kernel,
        out_shape=jax.ShapeDtypeStruct((B, T, d_out), x.dtype),
        grid_spec=pltpu.PrefetchScalarGridSpec(
            num_scalar_prefetch=0,
            grid=grid,
            in_specs=[
                pl.BlockSpec((1, tq, d_in), lambda b, qi, h, ki: (b, qi, 0)),
                pl.BlockSpec((1, tk, d_in), lambda b, qi, h, ki: (b, ki, 0)),
                pl.BlockSpec((1, d_in, hd), lambda b, qi, h, ki: (h, 0, 0)),
                pl.BlockSpec((1, d_in, hd), lambda b, qi, h, ki: (h, 0, 0)),
                pl.BlockSpec((1, d_in, hd), lambda b, qi, h, ki: (h, 0, 0)),
                pl.BlockSpec((1, hd, d_out), lambda b, qi, h, ki: (h, 0, 0)),
                pl.BlockSpec((1, d_out), lambda b, qi, h, ki: (0, 0)),
            ],
            out_specs=pl.BlockSpec((1, tq, d_out),
                                   lambda b, qi, h, ki: (b, qi, 0)),
            scratch_shapes=[
                pltpu.VMEM((tq, hd), jnp.bfloat16),    # scaled Q tile
                pltpu.VMEM((tq, 1), jnp.float32),      # running max m
                pltpu.VMEM((tq, 1), jnp.float32),      # running denom l
                pltpu.VMEM((tq, hd), jnp.float32),     # attention accumulator
                pltpu.VMEM((tq, d_out), jnp.float32),  # output-proj accumulator
            ]),
        compiler_params=pltpu.CompilerParams(
            dimension_semantics=("parallel", "parallel",
                                 "arbitrary", "arbitrary")),
    )(x_bf, x_bf, wq_h, wk_h, wv_h, wo_h, bo2)


def _reference(x, wq, wk, wv, wo, bo, *, num_heads: int):
    """Pure-JAX f32 reference mirroring the PyTorch forward (eval mode)."""
    B, T, d_in = x.shape
    d_out = wq.shape[1]
    hd = d_out // num_heads
    q = (x @ wq).reshape(B, T, num_heads, hd).transpose(0, 2, 1, 3)
    k = (x @ wk).reshape(B, T, num_heads, hd).transpose(0, 2, 1, 3)
    v = (x @ wv).reshape(B, T, num_heads, hd).transpose(0, 2, 1, 3)
    s = jnp.einsum("bhqd,bhkd->bhqk", q, k)
    mask = jnp.triu(jnp.ones((T, T), bool), k=1)
    s = jnp.where(mask[None, None], -jnp.inf, s)
    w = jax.nn.softmax(s / math.sqrt(hd), axis=-1)
    ctx = (jnp.einsum("bhqk,bhkd->bhqd", w, v)
           .transpose(0, 2, 1, 3).reshape(B, T, d_out))
    return ctx @ wo + bo


if __name__ == "__main__":
    # Small shapes consistent with the module's forward.
    B, T = 2, 8          # batch, tokens (context_len = T)
    d_in, d_out = 16, 32
    num_heads = 4        # head_dim = 8
    # dropout = 0.0 (inference)

    key = jax.random.PRNGKey(0)
    kx, kq, kk, kv, ko, kb = jax.random.split(key, 6)

    # Deterministic parameter init (nn.Linear-style uniform bounds).
    bq = 1.0 / math.sqrt(d_in)
    bo_bound = 1.0 / math.sqrt(d_out)
    x = jax.random.normal(kx, (B, T, d_in), dtype=jnp.float32)
    wq = jax.random.uniform(kq, (d_in, d_out), jnp.float32, -bq, bq)
    wk = jax.random.uniform(kk, (d_in, d_out), jnp.float32, -bq, bq)
    wv = jax.random.uniform(kv, (d_in, d_out), jnp.float32, -bq, bq)
    wo = jax.random.uniform(ko, (d_out, d_out), jnp.float32, -bo_bound, bo_bound)
    bo = jax.random.uniform(kb, (d_out,), jnp.float32, -bo_bound, bo_bound)

    out = multi_head_attention(x, wq, wk, wv, wo, bo,
                               num_heads=num_heads, dropout=0.0)
    out = jax.block_until_ready(out)

    ref = _reference(x, wq, wk, wv, wo, bo, num_heads=num_heads)
    assert out.shape == (B, T, d_out)
    # bf16 MXU operands + approx reciprocal => looser tolerance than pure f32.
    assert jnp.allclose(out, ref, atol=2e-2, rtol=2e-2), "mismatch vs reference"

    print("KERNEL_OK")
</pallas_src>

<mosaic_0001>
module attributes {stable_mosaic.version = 11 : i64} {
  func.func @_mha_flash_kernel(%arg0: i32, %arg1: i32, %arg2: i32, %arg3: i32, %arg4: memref<1x8x16xbf16, #tpu.memory_space<vmem>>, %arg5: memref<1x8x16xbf16, #tpu.memory_space<vmem>>, %arg6: memref<1x16x8xbf16, #tpu.memory_space<vmem>>, %arg7: memref<1x16x8xbf16, #tpu.memory_space<vmem>>, %arg8: memref<1x16x8xbf16, #tpu.memory_space<vmem>>, %arg9: memref<1x8x32xbf16, #tpu.memory_space<vmem>>, %arg10: memref<1x32xf32, #tpu.memory_space<vmem>>, %arg11: memref<1x8x32xf32, #tpu.memory_space<vmem>>, %arg12: memref<8x8xbf16, #tpu.memory_space<vmem>>, %arg13: memref<8x1xf32, #tpu.memory_space<vmem>>, %arg14: memref<8x1xf32, #tpu.memory_space<vmem>>, %arg15: memref<8x8xf32, #tpu.memory_space<vmem>>, %arg16: memref<8x32xf32, #tpu.memory_space<vmem>>) attributes {dimension_semantics = [#tpu.dimension_semantics<parallel>, #tpu.dimension_semantics<parallel>, #tpu.dimension_semantics<arbitrary>, #tpu.dimension_semantics<arbitrary>], iteration_bounds = array<i64: 2, 1, 4, 1>, scalar_prefetch = 0 : i64, scratch_operands = 5 : i64, tpu.core_type = #tpu.core_type<tc>, window_params = [{transform_indices = @transform_0, window_bounds = array<i64: 1, 8, 16>}, {transform_indices = @transform_1, window_bounds = array<i64: 1, 8, 16>}, {transform_indices = @transform_2, window_bounds = array<i64: 1, 16, 8>}, {transform_indices = @transform_3, window_bounds = array<i64: 1, 16, 8>}, {transform_indices = @transform_4, window_bounds = array<i64: 1, 16, 8>}, {transform_indices = @transform_5, window_bounds = array<i64: 1, 8, 32>}, {pipeline_mode = #tpu.pipeline_mode<synchronous>, transform_indices = @transform_6, window_bounds = array<i64: 1, 32>}, {transform_indices = @transform_7, window_bounds = array<i64: 1, 8, 32>}]} {
    %c0_i32 = arith.constant 0 : i32
    %0 = arith.cmpi eq, %arg2, %c0_i32 : i32
    %c0_i32_0 = arith.constant 0 : i32
    %1 = arith.cmpi eq, %arg3, %c0_i32_0 : i32
    %2 = arith.andi %0, %1 : i1
    %3 = arith.extui %2 : i1 to i32
    %c0_i32_1 = arith.constant 0 : i32
    %4 = arith.cmpi ne, %3, %c0_i32_1 : i32
    scf.if %4 {
      %cst = arith.constant 0.000000e+00 : f32
      %22 = vector.broadcast %cst : f32 to vector<8x32xf32>
      %c0 = arith.constant 0 : index
      %c0_10 = arith.constant 0 : index
      %23 = vector.load %arg16[%c0, %c0_10] : memref<8x32xf32, #tpu.memory_space<vmem>>, vector<8x32xf32>
      tpu.vector_store %arg16[%c0, %c0_10], %22 {strides = array<i32>} : memref<8x32xf32, #tpu.memory_space<vmem>>, vector<8x32xf32>,
    } else {
    }
    %c0_i32_2 = arith.constant 0 : i32
    %5 = arith.cmpi eq, %arg3, %c0_i32_2 : i32
    %6 = arith.extui %5 : i1 to i32
    %c0_i32_3 = arith.constant 0 : i32
    %7 = arith.cmpi ne, %6, %c0_i32_3 : i32
    scf.if %7 {
      %c0 = arith.constant 0 : index
      %c0_10 = arith.constant 0 : index
      %c0_11 = arith.constant 0 : index
      %22 = vector.load %arg4[%c0, %c0_10, %c0_11] : memref<1x8x16xbf16, #tpu.memory_space<vmem>>, vector<1x8x16xbf16>
      %23 = vector.shape_cast %22 : vector<1x8x16xbf16> to vector<8x16xbf16>
      %c0_12 = arith.constant 0 : index
      %c0_13 = arith.constant 0 : index
      %c0_14 = arith.constant 0 : index
      %24 = vector.load %arg6[%c0_12, %c0_13, %c0_14] : memref<1x16x8xbf16, #tpu.memory_space<vmem>>, vector<1x16x8xbf16>
      %25 = vector.shape_cast %24 : vector<1x16x8xbf16> to vector<16x8xbf16>
      %cst = arith.constant dense<0.000000e+00> : vector<8x8xf32>
      %26 = tpu.matmul %23, %25, %cst {dimension_numbers = #tpu.dot_dimension_numbers<[1], [0], [0], [1], [0, 0, 1, 1], [], []>} : vector<8x16xbf16>, vector<16x8xbf16>, vector<8x8xf32> -> vector<8x8xf32>
      %cst_15 = arith.constant 0.353553385 : f32
      %27 = vector.broadcast %cst_15 : f32 to vector<8x8xf32>
      %28 = arith.mulf %26, %27 : vector<8x8xf32>
      %29 = arith.truncf %28 : vector<8x8xf32> to vector<8x8xbf16>
      %c0_16 = arith.constant 0 : index
      %c0_17 = arith.constant 0 : index
      %30 = vector.load %arg12[%c0_16, %c0_17] : memref<8x8xbf16, #tpu.memory_space<vmem>>, vector<8x8xbf16>
      tpu.vector_store %arg12[%c0_16, %c0_17], %29 {strides = array<i32>} : memref<8x8xbf16, #tpu.memory_space<vmem>>, vector<8x8xbf16>,
      %cst_18 = arith.constant -1.000000e+30 : f32
      %31 = vector.broadcast %cst_18 : f32 to vector<8x1xf32>
      %c0_19 = arith.constant 0 : index
      %c0_20 = arith.constant 0 : index
      %32 = vector.load %arg13[%c0_19, %c0_20] : memref<8x1xf32, #tpu.memory_space<vmem>>, vector<8x1xf32>
      tpu.vector_store %arg13[%c0_19, %c0_20], %31 {strides = array<i32>} : memref<8x1xf32, #tpu.memory_space<vmem>>, vector<8x1xf32>,
      %cst_21 = arith.constant 0.000000e+00 : f32
      %33 = vector.broadcast %cst_21 : f32 to vector<8x1xf32>
      %c0_22 = arith.constant 0 : index
      %c0_23 = arith.constant 0 : index
      %34 = vector.load %arg14[%c0_22, %c0_23] : memref<8x1xf32, #tpu.memory_space<vmem>>, vector<8x1xf32>
      tpu.vector_store %arg14[%c0_22, %c0_23], %33 {strides = array<i32>} : memref<8x1xf32, #tpu.memory_space<vmem>>, vector<8x1xf32>,
      %cst_24 = arith.constant 0.000000e+00 : f32
      %35 = vector.broadcast %cst_24 : f32 to vector<8x8xf32>
      %c0_25 = arith.constant 0 : index
      %c0_26 = arith.constant 0 : index
      %36 = vector.load %arg15[%c0_25, %c0_26] : memref<8x8xf32, #tpu.memory_space<vmem>>, vector<8x8xf32>
      tpu.vector_store %arg15[%c0_25, %c0_26], %35 {strides = array<i32>} : memref<8x8xf32, #tpu.memory_space<vmem>>, vector<8x8xf32>,
    } else {
    }
    %c8_i32 = arith.constant 8 : i32
    %8 = arith.muli %arg1, %c8_i32 : i32
    %c7_i32 = arith.constant 7 : i32
    %9 = arith.addi %8, %c7_i32 : i32
    %c8_i32_4 = arith.constant 8 : i32
    %10 = arith.muli %arg3, %c8_i32_4 : i32
    %11 = arith.cmpi sle, %10, %9 : i32
    %12 = arith.extui %11 : i1 to i32
    %c0_i32_5 = arith.constant 0 : i32
    %13 = arith.cmpi ne, %12, %c0_i32_5 : i32
    scf.if %13 {
      %c0 = arith.constant 0 : index
      %c0_10 = arith.constant 0 : index
      %c0_11 = arith.constant 0 : index
      %22 = vector.load %arg5[%c0, %c0_10, %c0_11] : memref<1x8x16xbf16, #tpu.memory_space<vmem>>, vector<1x8x16xbf16>
      %23 = vector.shape_cast %22 : vector<1x8x16xbf16> to vector<8x16xbf16>
      %c0_12 = arith.constant 0 : index
      %c0_13 = arith.constant 0 : index
      %c0_14 = arith.constant 0 : index
      %24 = vector.load %arg7[%c0_12, %c0_13, %c0_14] : memref<1x16x8xbf16, #tpu.memory_space<vmem>>, vector<1x16x8xbf16>
      %25 = vector.shape_cast %24 : vector<1x16x8xbf16> to vector<16x8xbf16>
      %cst = arith.constant dense<0.000000e+00> : vector<8x8xf32>
      %26 = tpu.matmul %23, %25, %cst {dimension_numbers = #tpu.dot_dimension_numbers<[1], [0], [0], [1], [0, 0, 1, 1], [], []>} : vector<8x16xbf16>, vector<16x8xbf16>, vector<8x8xf32> -> vector<8x8xf32>
      %c0_15 = arith.constant 0 : index
      %c0_16 = arith.constant 0 : index
      %c0_17 = arith.constant 0 : index
      %27 = vector.load %arg8[%c0_15, %c0_16, %c0_17] : memref<1x16x8xbf16, #tpu.memory_space<vmem>>, vector<1x16x8xbf16>
      %28 = vector.shape_cast %27 : vector<1x16x8xbf16> to vector<16x8xbf16>
      %cst_18 = arith.constant dense<0.000000e+00> : vector<8x8xf32>
      %29 = tpu.matmul %23, %28, %cst_18 {dimension_numbers = #tpu.dot_dimension_numbers<[1], [0], [0], [1], [0, 0, 1, 1], [], []>} : vector<8x16xbf16>, vector<16x8xbf16>, vector<8x8xf32> -> vector<8x8xf32>
      %c0_19 = arith.constant 0 : index
      %c0_20 = arith.constant 0 : index
      %30 = vector.load %arg12[%c0_19, %c0_20] : memref<8x8xbf16, #tpu.memory_space<vmem>>, vector<8x8xbf16>
      %31 = arith.truncf %26 : vector<8x8xf32> to vector<8x8xbf16>
      %cst_21 = arith.constant dense<0.000000e+00> : vector<8x8xf32>
      %32 = tpu.matmul %30, %31, %cst_21 {dimension_numbers = #tpu.dot_dimension_numbers<[1], [1], [0], [0], [0, 0, 1, 0], [], []>} : vector<8x8xbf16>, vector<8x8xbf16>, vector<8x8xf32> -> vector<8x8xf32>
      %c8_i32_22 = arith.constant 8 : i32
      %33 = arith.muli %arg1, %c8_i32_22 : i32
      %34 = tpu.iota {dimensions = array<i32: 0>} : vector<8x8xi32>
      %35 = vector.broadcast %33 : i32 to vector<8x8xi32>
      %36 = arith.addi %35, %34 : vector<8x8xi32>
      %c8_i32_23 = arith.constant 8 : i32
      %37 = arith.muli %arg3, %c8_i32_23 : i32
      %38 = tpu.iota {dimensions = array<i32: 1>} : vector<8x8xi32>
      %39 = vector.broadcast %37 : i32 to vector<8x8xi32>
      %40 = arith.addi %39, %38 : vector<8x8xi32>
      %41 = arith.cmpi sle, %40, %36 : vector<8x8xi32>
      %cst_24 = arith.constant -1.000000e+30 : f32
      %42 = vector.broadcast %cst_24 : f32 to vector<8x8xf32>
      %43 = arith.select %41, %32, %42 : vector<8x8xi1>, vector<8x8xf32>
      %c0_25 = arith.constant 0 : index
      %c0_26 = arith.constant 0 : index
      %44 = vector.load %arg13[%c0_25, %c0_26] : memref<8x1xf32, #tpu.memory_space<vmem>>, vector<8x1xf32>
      %cst_27 = arith.constant dense<0xFF800000> : vector<8xf32>
      %45 = vector.multi_reduction <maximumf>, %43, %cst_27 [1] : vector<8x8xf32> to vector<8xf32>
      %46 = vector.shape_cast %45 : vector<8xf32> to vector<8x1xf32>
      %47 = arith.maximumf %44, %46 : vector<8x1xf32>
      %48 = arith.subf %44, %47 : vector<8x1xf32>
      %49 = math.exp %48 : vector<8x1xf32>
      %50 = vector.broadcast %47 : vector<8x1xf32> to vector<8x8xf32>
      %51 = arith.subf %43, %50 : vector<8x8xf32>
      %52 = math.exp %51 : vector<8x8xf32>
      %c0_28 = arith.constant 0 : index
      %c0_29 = arith.constant 0 : index
      %53 = vector.load %arg14[%c0_28, %c0_29] : memref<8x1xf32, #tpu.memory_space<vmem>>, vector<8x1xf32>
      %54 = arith.mulf %49, %53 : vector<8x1xf32>
      %cst_30 = arith.constant dense<0.000000e+00> : vector<8xf32>
      %55 = vector.multi_reduction <add>, %52, %cst_30 [1] : vector<8x8xf32> to vector<8xf32>
      %56 = vector.shape_cast %55 : vector<8xf32> to vector<8x1xf32>
      %57 = arith.addf %54, %56 : vector<8x1xf32>
      %c0_31 = arith.constant 0 : index
      %c0_32 = arith.constant 0 : index
      %58 = vector.load %arg14[%c0_31, %c0_32] : memref<8x1xf32, #tpu.memory_space<vmem>>, vector<8x1xf32>
      tpu.vector_store %arg14[%c0_31, %c0_32], %57 {strides = array<i32>} : memref<8x1xf32, #tpu.memory_space<vmem>>, vector<8x1xf32>,
      %c0_33 = arith.constant 0 : index
      %c0_34 = arith.constant 0 : index
      %59 = vector.load %arg15[%c0_33, %c0_34] : memref<8x8xf32, #tpu.memory_space<vmem>>, vector<8x8xf32>
      %60 = vector.broadcast %49 : vector<8x1xf32> to vector<8x8xf32>
      %61 = arith.mulf %60, %59 : vector<8x8xf32>
      %62 = arith.truncf %52 : vector<8x8xf32> to vector<8x8xbf16>
      %63 = arith.truncf %29 : vector<8x8xf32> to vector<8x8xbf16>
      %cst_35 = arith.constant dense<0.000000e+00> : vector<8x8xf32>
      %64 = tpu.matmul %62, %63, %cst_35 {dimension_numbers = #tpu.dot_dimension_numbers<[1], [0], [0], [1], [0, 0, 1, 1], [], []>} : vector<8x8xbf16>, vector<8x8xbf16>, vector<8x8xf32> -> vector<8x8xf32>
      %65 = arith.addf %61, %64 : vector<8x8xf32>
      %c0_36 = arith.constant 0 : index
      %c0_37 = arith.constant 0 : index
      %66 = vector.load %arg15[%c0_36, %c0_37] : memref<8x8xf32, #tpu.memory_space<vmem>>, vector<8x8xf32>
      tpu.vector_store %arg15[%c0_36, %c0_37], %65 {strides = array<i32>} : memref<8x8xf32, #tpu.memory_space<vmem>>, vector<8x8xf32>,
      %c0_38 = arith.constant 0 : index
      %c0_39 = arith.constant 0 : index
      %67 = vector.load %arg13[%c0_38, %c0_39] : memref<8x1xf32, #tpu.memory_space<vmem>>, vector<8x1xf32>
      tpu.vector_store %arg13[%c0_38, %c0_39], %47 {strides = array<i32>} : memref<8x1xf32, #tpu.memory_space<vmem>>, vector<8x1xf32>,
    } else {
    }
    %c0_i32_6 = arith.constant 0 : i32
    %14 = arith.cmpi eq, %arg3, %c0_i32_6 : i32
    %15 = arith.extui %14 : i1 to i32
    %c0_i32_7 = arith.constant 0 : i32
    %16 = arith.cmpi ne, %15, %c0_i32_7 : i32
    scf.if %16 {
      %c0 = arith.constant 0 : index
      %c0_10 = arith.constant 0 : index
      %22 = vector.load %arg15[%c0, %c0_10] : memref<8x8xf32, #tpu.memory_space<vmem>>, vector<8x8xf32>
      %c0_11 = arith.constant 0 : index
      %c0_12 = arith.constant 0 : index
      %23 = vector.load %arg14[%c0_11, %c0_12] : memref<8x1xf32, #tpu.memory_space<vmem>>, vector<8x1xf32>
      %24 = tpu.reciprocal %23 {approx = true} : vector<8x1xf32> -> vector<8x1xf32>
      %25 = vector.broadcast %24 : vector<8x1xf32> to vector<8x8xf32>
      %26 = arith.mulf %22, %25 : vector<8x8xf32>
      %c0_13 = arith.constant 0 : index
      %c0_14 = arith.constant 0 : index
      %27 = vector.load %arg16[%c0_13, %c0_14] : memref<8x32xf32, #tpu.memory_space<vmem>>, vector<8x32xf32>
      %28 = arith.truncf %26 : vector<8x8xf32> to vector<8x8xbf16>
      %c0_15 = arith.constant 0 : index
      %c0_16 = arith.constant 0 : index
      %c0_17 = arith.constant 0 : index
      %29 = vector.load %arg9[%c0_15, %c0_16, %c0_17] : memref<1x8x32xbf16, #tpu.memory_space<vmem>>, vector<1x8x32xbf16>
      %30 = vector.shape_cast %29 : vector<1x8x32xbf16> to vector<8x32xbf16>
      %cst = arith.constant dense<0.000000e+00> : vector<8x32xf32>
      %31 = tpu.matmul %28, %30, %cst {dimension_numbers = #tpu.dot_dimension_numbers<[1], [0], [0], [1], [0, 0, 1, 1], [], []>} : vector<8x8xbf16>, vector<8x32xbf16>, vector<8x32xf32> -> vector<8x32xf32>
      %32 = arith.addf %27, %31 : vector<8x32xf32>
      %c0_18 = arith.constant 0 : index
      %c0_19 = arith.constant 0 : index
      %33 = vector.load %arg16[%c0_18, %c0_19] : memref<8x32xf32, #tpu.memory_space<vmem>>, vector<8x32xf32>
      tpu.vector_store %arg16[%c0_18, %c0_19], %32 {strides = array<i32>} : memref<8x32xf32, #tpu.memory_space<vmem>>, vector<8x32xf32>,
    } else {
    }
    %c3_i32 = arith.constant 3 : i32
    %17 = arith.cmpi eq, %arg2, %c3_i32 : i32
    %c0_i32_8 = arith.constant 0 : i32
    %18 = arith.cmpi eq, %arg3, %c0_i32_8 : i32
    %19 = arith.andi %17, %18 : i1
    %20 = arith.extui %19 : i1 to i32
    %c0_i32_9 = arith.constant 0 : i32
    %21 = arith.cmpi ne, %20, %c0_i32_9 : i32
    scf.if %21 {
      %c0 = arith.constant 0 : index
      %c0_10 = arith.constant 0 : index
      %22 = vector.load %arg16[%c0, %c0_10] : memref<8x32xf32, #tpu.memory_space<vmem>>, vector<8x32xf32>
      %c0_11 = arith.constant 0 : index
      %c0_12 = arith.constant 0 : index
      %23 = vector.load %arg10[%c0_11, %c0_12] : memref<1x32xf32, #tpu.memory_space<vmem>>, vector<1x32xf32>
      %24 = vector.broadcast %23 : vector<1x32xf32> to vector<8x32xf32>
      %25 = arith.addf %22, %24 : vector<8x32xf32>
      %c0_13 = arith.constant 0 : index
      %c0_14 = arith.constant 0 : index
      %c0_15 = arith.constant 0 : index
      %26 = vector.load %arg11[%c0_13, %c0_14, %c0_15] : memref<1x8x32xf32, #tpu.memory_space<vmem>>, vector<1x8x32xf32>
      %27 = vector.shape_cast %26 : vector<1x8x32xf32> to vector<8x32xf32>
      %28 = vector.shape_cast %25 : vector<8x32xf32> to vector<1x8x32xf32>
      tpu.vector_store %arg11[%c0_13, %c0_14, %c0_15], %28 {strides = array<i32>} : memref<1x8x32xf32, #tpu.memory_space<vmem>>, vector<1x8x32xf32>,
    } else {
    }
    return
  }
  func.func @transform_0(%arg0: i32, %arg1: i32, %arg2: i32, %arg3: i32) -> (i32, i32, i32) {
    %c0_i32 = arith.constant 0 : i32
    %c0_i32_0 = arith.constant 0 : i32
    return %arg0, %arg1, %c0_i32 : i32, i32, i32
  }
  func.func @transform_1(%arg0: i32, %arg1: i32, %arg2: i32, %arg3: i32) -> (i32, i32, i32) {
    %c0_i32 = arith.constant 0 : i32
    %c0_i32_0 = arith.constant 0 : i32
    return %arg0, %arg3, %c0_i32 : i32, i32, i32
  }
  func.func @transform_2(%arg0: i32, %arg1: i32, %arg2: i32, %arg3: i32) -> (i32, i32, i32) {
    %c0_i32 = arith.constant 0 : i32
    %c0_i32_0 = arith.constant 0 : i32
    %c0_i32_1 = arith.constant 0 : i32
    return %arg2, %c0_i32, %c0_i32_0 : i32, i32, i32
  }
  func.func @transform_3(%arg0: i32, %arg1: i32, %arg2: i32, %arg3: i32) -> (i32, i32, i32) {
    %c0_i32 = arith.constant 0 : i32
    %c0_i32_0 = arith.constant 0 : i32
    %c0_i32_1 = arith.constant 0 : i32
    return %arg2, %c0_i32, %c0_i32_0 : i32, i32, i32
  }
  func.func @transform_4(%arg0: i32, %arg1: i32, %arg2: i32, %arg3: i32) -> (i32, i32, i32) {
    %c0_i32 = arith.constant 0 : i32
    %c0_i32_0 = arith.constant 0 : i32
    %c0_i32_1 = arith.constant 0 : i32
    return %arg2, %c0_i32, %c0_i32_0 : i32, i32, i32
  }
  func.func @transform_5(%arg0: i32, %arg1: i32, %arg2: i32, %arg3: i32) -> (i32, i32, i32) {
    %c0_i32 = arith.constant 0 : i32
    %c0_i32_0 = arith.constant 0 : i32
    %c0_i32_1 = arith.constant 0 : i32
    return %arg2, %c0_i32, %c0_i32_0 : i32, i32, i32
  }
  func.func @transform_6(%arg0: i32, %arg1: i32, %arg2: i32, %arg3: i32) -> (i32, i32) {
    %c0_i32 = arith.constant 0 : i32
    %c0_i32_0 = arith.constant 0 : i32
    %c0_i32_1 = arith.constant 0 : i32
    return %c0_i32, %c0_i32_0 : i32, i32
  }
  func.func @transform_7(%arg0: i32, %arg1: i32, %arg2: i32, %arg3: i32) -> (i32, i32, i32) {
    %c0_i32 = arith.constant 0 : i32
    %c0_i32_0 = arith.constant 0 : i32
    return %arg0, %arg1, %c0_i32 : i32, i32, i32
  }
}

</mosaic_0001>

<bundles_post_ra>
// kernel: tpu_custom_call.1
= control target key start
LH: loop header
LB: loop body
LE: loop exit
PB: predicated region body
PF: predicated region fallthrough
CT: control target
= control target key end

     0   :  { %s1490_s0 = inlined_call_operand.vmem [shape: bf16[2,8,16], index: 0, kind: input, shape index: {}]   ;;  %s1491_s1 = inlined_call_operand.vmem [shape: bf16[2,8,16], index: 1, kind: input, shape index: {}]   ;;  %s1492_s2 = inlined_call_operand.vmem [shape: bf16[4,16,8], index: 2, kind: input, shape index: {}]   ;;  %s1493_s3 = inlined_call_operand.vmem [shape: bf16[4,16,8], index: 3, kind: input, shape index: {}]   ;;  %s1494_s4 = inlined_call_operand.vmem [shape: bf16[4,16,8], index: 4, kind: input, shape index: {}]   ;;  %s1495_s5 = inlined_call_operand.vmem [shape: bf16[4,8,32], index: 5, kind: input, shape index: {}]   ;;  %s1496_s6 = inlined_call_operand.vmem [shape: f32[1,32], index: 6, kind: input, shape index: {}]   ;;  %s1497_s7 = inlined_call_operand.hbm [shape: f32[2,8,32], index: 7, kind: output, shape index: {}]  }
   0x1   :  { %1504 = sst [smem:[#allocation17_spill]] %s1490_s0 }
   0x2   :  { %1505 = sst [smem:[#allocation18_spill]] %s1491_s1 }
   0x3   :  { %12 = vsyncpa [#allocation8], 0 }
   0x4   :  { %14 = vsyncpa [#allocation8 + $0x1], 0  ;;  %s1295_s24 = smov 0   ;;  %s1297_s25 = smov 0  }
   0x5   :  { %s1299_s26 = smov 0   ;;  %s1301_s27 = smov 0  }
   0x6   :  { %s1303_s28 = smov 0   ;;  %s1305_s29 = smov 0  }
   0x7   :  { %s1307_s30 = smov 0   ;;  %s1309_s8 = smov 0  }
   0x8 LB: > { %1506 = sst [smem:[#allocation10_spill]] %s1227_s26  ;;  %s982_s9 = sadd.s32 4294967295, %s1247_s8   ;;  %s1247_s8 = sphi %s1309_s8, %s20_s8   ;;  %s1243_s30 = sphi %s1307_s30, %s1527_s30   ;;  %s1239_s29 = sphi %s1305_s29, %s1523_s29   ;;  %s1235_s28 = sphi %s1303_s28, %s1522_s28   ;;  %s1231_s27 = sphi %s1301_s27, %s1521_s27   ;;  %s1227_s26 = sphi %s1299_s26, %s1520_s26   ;;  %s1223_s25 = sphi %s1297_s25, %s1526_s25   ;;  %s1219_s24 = sphi %s1295_s24, %s1525_s24  }
   0x9   : > { %1507 = sst [smem:[#allocation11_spill]] %s1239_s29  ;;  %s983_s10 = sadd.s32 4294967294, %s1247_s8  }
   0xa   : > { %1508 = sst [smem:[#allocation12_spill]] %s1243_s30  ;;  %s38_s11 = sadd.s32 1, %s1239_s29 }
   0xb   : > { %p40_p0 = scmp.ge.s32.totalorder %s38_s11, 4  ;;  %s46_s12 = sadd.s32 1, %s1243_s30 }
   0xc   : > { %p246_p1 = scmp.ne.s32.totalorder %s1227_s26, %s1223_s25  ;;  %p247_p2 = scmp.eq.s32.totalorder %s982_s9, 7 }
   0xd   : > { %s1529_s11 = smov (%p40_p0, %s38_s11), 0  ;;  %s1531_s12 = smov (!%p40_p0, %s46_s12), %s1243_s30 }
   0xe   : > { %1509 = sst [smem:[#allocation13_spill]] %s1529_s11  ;;  %p1344_p3 = por %p247_p2, %p246_p1 }
   0xf   : > { %p252_p4 = scmp.ne.s32.totalorder %s1223_s25, %s1219_s24  ;;  %p48_p5 = scmp.ge.s32.totalorder %s1531_s12, 2 }
  0x10   : > { %p253_p6 = scmp.eq.s32.totalorder %s983_s10, 7  ;;  %p986_p7 = scmp.ge.s32.totalorder %s1247_s8, 1 }
  0x11   : > { %p325_p8 = scmp.lt.s32.totalorder %s1247_s8, 9  ;;  %s1533_s12 = smov (%p48_p5, %s1531_s12), 0 }
  0x12   : > { %1511 = sst [smem:[#allocation14_spill]] %s1533_s12  ;;  %p1354_p9 = por %p253_p6, %p252_p4 }
  0x13   : > { %p326_p10 = pnand %p986_p7, %p325_p8  ;;  %s231_s15 = ssub.s32 %s1243_s30, %s1533_s12 }
  0x14   : > { %s1512_s14 = scalar_select %p1354_p9, 1, 0 }
  0x15   : > { %s236_s16 = sadd.s32 1, %s1227_s26  ;;  %p234_p11 = scmp.eq.s32.totalorder %s231_s15, 0 }
  0x16   : > { %1513 = sst [smem:[#allocation15_spill]] %s1512_s14  ;;  %329 = sbr.rel (%p326_p10) target bundleno = 1314 (0x522), region = 48 }
  0x17   : > { %s1362_s17 = scalar_select %p234_p11, %s1227_s26, %s236_s16  }
  0x18   : > { %s1499_s18 = sand.u32 (!%p326_p10), 1, %s1223_s25   ;;  %p385_p12 = scmp.lt.s32.totalorder (!%p326_p10), %s1235_s28, 1 }
  0x19   : > { %1514 = sst [smem:[#allocation16_spill]] %s1362_s17  ;;  %s1368_s19 = sshll.u32 (!%p326_p10), %s1499_s18, 3 }
  0x1a   : > { %p399_p13 = scmp.lt.s32.totalorder (!%p326_p10), %s1231_s27, 3  ;;  %p419_p0 = scmp.eq.s32.totalorder (!%p326_p10), %s1231_s27, 0 }
  0x1b   : > { %s1515_s0 = sld [smem:[#allocation17_spill]] (!%p326_p10)  ;;  %s1516_s1 = sld [smem:[#allocation18_spill]] (!%p326_p10) }
  0x1d   : > { %s386_s20 = scalar_select %p385_p12, %s1235_s28, 1 }
  0x1e   : > { %s400_s21 = scalar_select %p399_p13, %s1231_s27, 3 }
  0x1f   : > { %s988_s22 = sshll.u32 %s386_s20, 2  ;;  %424 = sbr.rel (!%p419_p0) target bundleno = 38 (0x26), region = 52  ;;  %vm425_vm0 = vcmask (%p419_p0), 261120   ;;  %v1249_v0 = vmov (%p419_p0), 0.0  }
  0x20   : > { %s1380_s11 = sshll.u32 %s400_s21, 3  ;;  %s996_s18 = sshll.u32 %s400_s21, 2  ;;  %426 = vst.msk [vmem:[#allocation6] sm:$0xff] (%p419_p0), %vm425_vm0, %v1249_v0 }
  0x21   : > { %s391_s10 = scalar_lea.vmem %s1515_s0, %s988_s22  ;;  %s398_s12 = scalar_lea.vmem %s1516_s1, %s988_s22 }
  0x22   : > { %s403_s17 = scalar_lea.vmem %s1492_s2, %s1380_s11  ;;  %s408_s14 = scalar_lea.vmem %s1493_s3, %s1380_s11 }
  0x23   : > { %s413_s0 = scalar_lea.vmem %s1494_s4, %s1380_s11  ;;  %s1397_s16 = scalar_lea.vmem %s1495_s5, %s996_s18 }
  0x24   : > { %s384_s1 = scalar_lea.vmem [#allocation7], %s1368_s19 }
  0x26 PF: > { %v1144_v1 = vld [vmem:[%s403_s17] sm:$0xff]   ;;  %v1250_v2 = vmov 0.0   ;;  %vm1251_vm1 = vmmov 0   ;;  %vm439_vm2 = vcmask 130048   ;;  %vm490_vm3 = vcmask 64512   ;;  %p808_p1 = scmp.eq.s32.totalorder %s1231_s27, 3 }
  0x27   : > { %1030 = vmatprep.subr.bf16.mxu0 %v1250_v2  ;;  %1036 = vmatprep.subr.bf16.mxu1 %v1250_v2  ;;  %v1145_v3 = vld [vmem:[%s408_s14] sm:$0xff]   ;;  %491 = vst.msk [vmem:[#allocation5] sm:$0xff] %vm490_vm3, %v1250_v2  ;;  %vm485_vm4 = vcmask 60416   ;;  %vm487_vm5 = vcmask 7168   ;;  %v1252_v20 = vmov -1e+30   ;;  %v649_v21 = vlaneseq }
  0x28   : > { %1031 = vmatpush3.bf16.msra.mxu0 %v1144_v1  ;;  %1032 = vmatprep.mubr.msk.bf16.mxu0 %vm1251_vm1, %v1250_v2  ;;  %v430_v4 = vld [vmem:[%s391_s10] sm:$0xf]  ;;  %488 = vst.msk [vmem:[#allocation3] sm:$0xff] %vm487_vm5, %v1252_v20  ;;  %489 = vst.msk [vmem:[#allocation4] sm:$0xff] %vm487_vm5, %v1250_v2  ;;  %v1253_v30 = vmov 0   ;;  %vm695_vm7 = vcmask 1043456  }
  0x29   : > { %1037 = vmatpush3.bf16.msra.mxu1 %v1145_v3  ;;  %1038 = vmatprep.mubr.msk.bf16.mxu1 %vm1251_vm1, %v1250_v2  ;;  %v499_v5 = vld [vmem:[%s398_s12] sm:$0xf]  ;;  %v650_v22 = vshrl.u32 %v649_v21, 7  ;;  %v654_v23 = vand.u32 127, %v649_v21  ;;  %vm806_vm8 = vcmask 261120  }
  0x2a   : > { %1048 = vmatprep.subr.bf16.mxu1 %v1250_v2  ;;  %1042 = vmatprep.subr.bf16.mxu0 %v1250_v2  ;;  %v1146_v19 = vld [vmem:[%s413_s0] sm:$0xff]  }
  0x2b   : > { %1033 = vmatmul.mubr.msk.bf16.vlgmr.msra.gmra.mrb[0].mxu0 %vm439_vm2, %v430_v4  ;;  %vm657_vm6 = vcmp.le.s32.totalorder %v654_v23, %v650_v22  ;;  %1142 = vset.pattern.permute.xlu0 %v1253_v30  ;;  %v756_v49 = vld [vmem:[%s1397_s16] sm:$0xf] }
  0x2c   : > { %1039 = vmatmul.mubr.msk.bf16.vlgmr.msra.gmra.mrb[0].mxu1 %vm439_vm2, %v499_v5  ;;  %1044 = vmatprep.mubr.msk.bf16.mxu0 %vm1251_vm1, %v1250_v2  ;;  %v763_v50 = vsel %vm695_vm7, %v756_v49, 0 }
  0x2d   : > { %1050 = vmatprep.mubr.msk.bf16.mxu1 %vm1251_vm1, %v1250_v2  ;;  %1043 = vmatpush3.bf16.msra.mxu0 %v1146_v19 }
  0x2e   : > { %1054 = vmatprep.subr.bf16.mxu0 %v1250_v2  ;;  %1143 = vset.pattern.permute.xlu1 %v1253_v30  ;;  %v683_v57 = vld [vmem:[#allocation5] sm:$0xff] }
  0x2f   : > { %v659_v31 = vld [vmem:[#allocation3] sm:$0xff]  ;;  %v675_v51 = vld [vmem:[#allocation4] sm:$0xff] }
  0x33   : > { %1045 = vmatmul.mubr.msk.bf16.vlgmr.msra.gmra.mrb[4].mxu0 %vm439_vm2, %v499_v5  ;;  %v754_v5 = vld [vmem:[#allocation6] sm:$0xff] }
  0x34   : > { %1056 = vmatprep.mubr.msk.bf16.mxu0 %vm1251_vm1, %v1250_v2 }
  0xfe   : > { %v477_v6 = vpop.f32.mrb[0].mxu0 }
  0xff   : > { %v483_v7 = vmul.f32 0.35355338, %v477_v6  ;;  %v546_v8 = vpop.f32.mrb[0].mxu1  ;;  %v1034_v9 = vpop.f32.mrb[1].mxu0 }
 0x100   : > { %v601_v10 = vpack.c.bf16 %v546_v8, %v546_v8  ;;  %v1040_v11 = vpop.f32.mrb[1].mxu1  ;;  %v480_v12 = vpop.f32.mrb[2].mxu0 }
 0x101   : > { %v484_v13 = vpack.c.bf16 %v483_v7, %v483_v7  ;;  %v549_v14 = vpop.f32.mrb[2].mxu1  ;;  %v1035_v15 = vpop.f32.mrb[3].mxu0  ;;  %v1008_v12 = vld [vmem:[%s1496_s6] ss:$0 sm:$0xff] (%p808_p1) }
 0x102   : > { %v607_v16 = vsel %vm490_vm3, %v601_v10, 0  ;;  %v1041_v17 = vpop.f32.mrb[3].mxu1 }
 0x103   : > { %486 = vst.msk [vmem:[#allocation2] sm:$0xf] %vm485_vm4, %v484_v13  ;;  %1049 = vmatpush3.bf16.xpose.msra.mxu1 %v607_v16 }
 0x104   : > { %1060 = vmatprep.subr.bf16.mxu1 %v1250_v2 }
 0x106   : > { %v594_v35 = vpop.f32.mrb[4].mxu0 }
 0x107   : > { %v691_v36 = vpack.c.bf16 %v594_v35, %v594_v35  ;;  %v1046_v37 = vpop.f32.mrb[5].mxu0 }
 0x108   : > { %v597_v38 = vpop.f32.mrb[6].mxu0 }
 0x109   : > { %v697_v39 = vsel %vm695_vm7, %v691_v36, 0  ;;  %v1047_v40 = vpop.f32.mrb[7].mxu0 }
 0x10a   : > { %v600_v18 = vld [vmem:[#allocation2] sm:$0xf]  ;;  %1055 = vmatpush3.bf16.msra.mxu0 %v697_v39 }
 0x10b   : > { %1051 = vmatmul.mubr.msk.bf16.vlgmr.msra.gmra.mrb[4].mxu1 %vm490_vm3, %v600_v18 }
 0x10c   : > { %1062 = vmatprep.mubr.msk.bf16.mxu1 %vm1251_vm1, %v1250_v2  ;;  %1061 = vmatpush3.bf16.msra.mxu1 %v763_v50 }
 0x1de   : > { %v643_v24 = vpop.f32.mrb[4].mxu1 }
 0x1df   : > { %v658_v25 = vsel %vm657_vm6, %v643_v24, -1e+30  ;;  %v1052_v26 = vpop.f32.mrb[5].mxu1 }
 0x1e0   : > { %v646_v27 = vpop.f32.mrb[6].mxu1  ;;  %v660_v28 = vsel %vm490_vm3, %v658_v25, -inf }
 0x1e1   : > { %661 = vmax.xlane.f32.xlu0 %v660_v28  ;;  %v1053_v29 = vpop.f32.mrb[7].mxu1 }
 0x26e   : > { %v662_v32 = vpop.xlane.xlu0 %661 }
 0x26f   : > { %v663_v33 = vmax.f32 %v659_v31, %v662_v32 }
 0x271   : > { %v664_v34 = vsub.f32 %v659_v31, %v663_v33  ;;  %741 = vst.msk [vmem:[#allocation3] sm:$0xff] %vm487_vm5, %v663_v33  ;;  %669 = vperm.xlu0 %1142, %v663_v33  }
 0x273   : > { %v665_v47 = vmul.f32 1.442695, %v664_v34 }
 0x2f0   : > { %v670_v41 = vpop.permute.xlu0 %669 }
 0x2f1   : > { %v672_v42 = vsub.f32 %v658_v25, %v670_v41 }
 0x2f3   : > { %v673_v43 = vmul.f32 1.442695, %v672_v42 }
 0x2f5   : > { %1147 = vpow2.f32 %v673_v43 }
 0x2f6   : > { %1149 = vpow2.f32 %v665_v47 }
 0x2ff   : > { %v1148_v44 = vpop.eup %1147 }
 0x300   : > { %v677_v45 = vsel %vm490_vm3, %v1148_v44, 0.0  ;;  %v690_v46 = vpack.c.bf16 %v1148_v44, %v1148_v44  ;;  %v1150_v48 = vpop.eup %1149 }
 0x301   : > { %678 = vadd.xlane.f32.xlu1 %v677_v45  ;;  %v676_v52 = vmul.f32 %v1150_v48, %v675_v51 }
 0x302   : > { %1057 = vmatmul.mubr.msk.bf16.vlgmr.msra.gmra.mrb[8].mxu0 %vm490_vm3, %v690_v46 }
 0x312   : > { %686 = vperm.xlu1 %1143, %v1150_v48  }
 0x38e   : > { %v679_v53 = vpop.xlane.xlu1 %678 }
 0x38f   : > { %v680_v54 = vadd.f32 %v679_v53, %v676_v52 }
 0x391   : > { %682 = vst.msk [vmem:[#allocation4] sm:$0xff] %vm487_vm5, %v680_v54 }
 0x392   : > { %v687_v58 = vpop.permute.xlu1 %686 }
 0x393   : > { %v689_v59 = vmul.f32 %v687_v58, %v683_v57 }
 0x398   : > { %v746_v55 = vld [vmem:[#allocation4] sm:$0xff] }
 0x399   : > { %1151 = vrcp.f32 %v746_v55 }
 0x3a3   : > { %v1152_v56 = vpop.eup %1151 }
 0x3a4   : > { %750 = vperm.xlu1 %1143, %v1152_v56  }
 0x3d5   : > { %v733_v60 = vpop.f32.mrb[8].mxu0 }
 0x3d6   : > { %v739_v61 = vadd.f32 %v733_v60, %v689_v59  ;;  %v1058_v62 = vpop.f32.mrb[9].mxu0 }
 0x3d7   : > { %v736_v63 = vpop.f32.mrb[10].mxu0 }
 0x3d8   : > { %740 = vst.msk [vmem:[#allocation5] sm:$0xff] %vm490_vm3, %v739_v61  ;;  %v1059_v0 = vpop.f32.mrb[11].mxu0 }
 0x3df   : > { %v745_v2 = vld [vmem:[#allocation5] sm:$0xff] }
 0x423   : > { %v751_v1 = vpop.permute.xlu1 %750 }
 0x424   : > { %v753_v3 = vmul.f32 %v751_v1, %v745_v2 }
 0x426   : > { %v755_v4 = vpack.c.bf16 %v753_v3, %v753_v3 }
 0x428   : > { %1063 = vmatmul.mubr.msk.bf16.vlgmr.msra.gmra.mrb[8].mxu1 %vm490_vm3, %v755_v4 }
 0x4f8   : > { %812 = sbr.rel (!%p808_p1) target bundleno = 1289 (0x509), region = 68 }
 0x4fb   : > { %v799_v6 = vpop.f32.mrb[8].mxu1 }
 0x4fc   : > { %v805_v7 = vadd.f32 %v799_v6, %v754_v5  ;;  %v1064_v8 = vpop.f32.mrb[9].mxu1 }
 0x4fd   : > { %v802_v9 = vpop.f32.mrb[10].mxu1 }
 0x4fe   : > { %807 = vst.msk [vmem:[#allocation6] sm:$0xff] %vm806_vm8, %v805_v7  ;;  %v1065_v10 = vpop.f32.mrb[11].mxu1 }
 0x505   : > { %v813_v11 = vld [vmem:[#allocation6] sm:$0xff] }
 0x506   : > { %v821_v13 = vadd.f32 %v1008_v12, %v813_v11 }
 0x508   : > { %823 = vst.msk [vmem:[%s384_s1] sm:$0xff] %vm806_vm8, %v821_v13 }
 0x509 PF: > { %s1010_s27 = sshll.u32 %s1235_s28, 7  ;;  %s839_s17 = sshll.u32 %s384_s1, 4  ;;  %s840_s17 = int_to_ptr.vmem [resolvable:$true] %s839_s17 }
 0x50a   : > { %s1439_s14 = scalar_lea.hbm %s1497_s7, %s1010_s27  ;;  %s1517_s18 = sand.u32 1, %s1223_s25  }
 0x50b   : > { %s825_s21 = scalar_lea.sflag [#allocation8], %s1517_s18  ;;  %s1153_s10 = scalar_lea.vmem %s840_s17, 128 }
 0x50c   : > { %p1154_p2 = scmp.ne.s32.totalorder %s840_s17, %s1153_s10  ;;  %s1254_s20 = smov [#allocation7]  }
 0x50d   : > { %s1157_s23 = sshll.u32 %s1254_s20, 4  ;;  %s1158_s23 = int_to_ptr.vmem [resolvable:$false] %s1157_s23 }
 0x50e   : > { %p1155_p4 = pnand %p1154_p2, %p1344_p3  ;;  %s1159_s9 = scalar_lea.vmem %s1158_s23, 256 }
 0x50f   : > { %p1160_p6 = scmp.lt.s32.totalorder %s840_s17, %s1158_s23  ;;  %p1161_p7 = scmp.lt.s32.totalorder %s1159_s9, %s1153_s10 }
 0x510   : > { %p1156_p5 = pneg %p1155_p4 }
 0x511   : > { %p1162_p8 = por %p1161_p7, %p1160_p6 }
 0x513   : > { %p1163_p10 = pnand %p1162_p8, %p1156_p5 }
 0x515   : > { %1166 = shalt.err (!%p1163_p10)
}
 0x516   : > { %s1167_s1 = scalar_lea.hbm %s1439_s14, 128  ;;  %s1171_s15 = scalar_lea.hbm %s1497_s7, 256 }
 0x517   : > { %p1168_p11 = scmp.ne.s32.totalorder %s1439_s14, %s1167_s1  ;;  %p1172_p0 = scmp.lt.u32.totalorder %s1439_s14, %s1497_s7 }
 0x518   : > { %p1173_p1 = scmp.lt.u32.totalorder %s1171_s15, %s1167_s1  ;;  %p1175_p4 = scmp.lt.u32.totalorder %s1167_s1, %s1439_s14 }
 0x519   : > { %p1169_p12 = pnand %p1168_p11, %p1344_p3 }
 0x51a   : > { %p1174_p2 = por %p1173_p1, %p1172_p0 }
 0x51b   : > { %p1170_p13 = pneg %p1169_p12 }
 0x51c   : > { %p1176_p5 = por %p1175_p4, %p1174_p2 }
 0x51e   : > { %p1177_p6 = pnand %p1176_p5, %p1170_p13 }
 0x520   : > { %1180 = shalt.err (!%p1177_p6)
}
 0x521   : > { %1066 = dma.vmem_to_hbm [thread:$0]  (%p1344_p3), %s840_s17, 128, %s1439_s14, %s825_s21  }
 0x522 PF: > { %p1072_p7 = scmp.ge.s32.totalorder %s1247_s8, 2  ;;  %s851_s29 = sand.u32 1, %s1219_s24  }
 0x523   : > { %s852_s0 = scalar_lea.sflag [#allocation8], %s851_s29 }
 0x524   : > { %p1069_p8 = pnand %p1072_p7, %p1354_p9 }
 0x526   : > { %1214 = dma.done.wait (!%p1069_p8), %s852_s0, 128  }
 0x527   : > { %1216 = vsyncadd (!%p1069_p8), %s852_s0, 4294967168  ;;  %s20_s8 = sadd.s32 1, %s1247_s8   ;;  %s1519_s30 = sld [smem:[#allocation10_spill]] }
 0x528   : > { %p17_p10 = scmp.ge.s32.totalorder %s20_s8, 10   ;;  %s1520_s26 = sld [smem:[#allocation16_spill]] }
 0x529   : > { %s1521_s27 = sld [smem:[#allocation11_spill]]  ;;  %s1522_s28 = sld [smem:[#allocation12_spill]] }
 0x52a   : > { %s1523_s29 = sld [smem:[#allocation13_spill]]  ;;  %s1524_s13 = sld [smem:[#allocation14_spill]] }
 0x52b   : > { %s1525_s24 = smov %s1223_s25  ;;  %19 = sbr.rel (!%p17_p10) target bundleno = 8 (0x8), region = 118 }
 0x52d   : > { %s1526_s25 = smov %s1519_s30 }
 0x530   : > { %s1527_s30 = smov %s1524_s13 }
 0x532   :  { %857 = vsyncpa [#allocation8], 1 }
 0x533   :  { %859 = vsyncpa [#allocation8 + $0x1], 1 }

</bundles_post_ra>
